<compile_context>
chip_gen: v6e
topology: v6e:2x2x1
jax: 0.10.0
libtpu: 0.0.40
codegen_flags: <defaults>
</compile_context>

<pallas_src>
import functools

import jax
import jax.numpy as jnp
from jax.experimental import pallas as pl
from jax.experimental.pallas import tpu as pltpu


# ---------------------------------------------------------------------------
# Shared attention + FFN + pool body (operates on a (M, D) token block, M=BT*N)
# ---------------------------------------------------------------------------
def _attn_ffn_pool(tokens, wq3, wk3, wv3, wo3, wf1, bf1, wf2, bf2, add_mask,
                   poolm, *, qk_scale):
    # tokens: (M, D) float; wq3/wk3/wv3: (H, D, Dh) bf16; wo3: (H, Dh, D) bf16
    # wf1: (D, hidden) bf16; wf2: (hidden, D) bf16; biases f32
    # add_mask: (M, M) f32 additive (0 / -1e30) causal + batch-block mask
    heads = wq3.shape[0]
    m_rows = tokens.shape[0]
    d = tokens.shape[1]

    xb = tokens.astype(jnp.bfloat16)
    # heads as a leading batch dim: cheap leading-dim broadcast, no lane reshuffle
    xh = jnp.broadcast_to(xb[None, :, :], (heads, m_rows, d))          # (H, M, D)

    q = jnp.einsum('hmd,hde->hme', xh, wq3, preferred_element_type=jnp.float32)
    k = jnp.einsum('hmd,hde->hme', xh, wk3, preferred_element_type=jnp.float32)
    v = jnp.einsum('hmd,hde->hme', xh, wv3, preferred_element_type=jnp.float32)

    # qk_norm=True: l2-normalize q and k per head (f32 math).
    q = q * jax.lax.rsqrt(jnp.sum(q * q, axis=-1, keepdims=True) + 1e-12)
    k = k * jax.lax.rsqrt(jnp.sum(k * k, axis=-1, keepdims=True) + 1e-12)

    logits = jnp.einsum('hne,hme->hnm', q.astype(jnp.bfloat16),
                        k.astype(jnp.bfloat16),
                        preferred_element_type=jnp.float32) * qk_scale
    logits = logits + add_mask[None, :, :]                             # f32 mask path
    mmax = jnp.max(logits, axis=-1, keepdims=True)
    p = jnp.exp(logits - mmax)
    denom = jnp.sum(p, axis=-1, keepdims=True)
    attn = p * pl.reciprocal(denom, approx=True)                       # EUP divide

    ctx = jnp.einsum('hnm,hme->hne', attn.astype(jnp.bfloat16),
                     v.astype(jnp.bfloat16),
                     preferred_element_type=jnp.float32)               # (H, M, Dh)

    # Output projection: per-head partials then sum over the leading (slab) axis.
    a_part = jnp.einsum('hne,hed->hnd', ctx.astype(jnp.bfloat16), wo3,
                        preferred_element_type=jnp.float32)            # (H, M, D)
    a = a_part[0]
    for h in range(1, heads):
        a = a + a_part[h]                                              # (M, D)

    # FeedForward (Linear -> GELU -> Linear) with residual around the FFN only
    # (matches: x = ffn(x) + x, where x is the attention output).
    h1 = jnp.dot(a.astype(jnp.bfloat16), wf1,
                 preferred_element_type=jnp.float32) + bf1
    h1 = jax.nn.gelu(h1, approximate=True)   # TODO(synk): exact erf GELU
    y = jnp.dot(h1.astype(jnp.bfloat16), wf2,
                preferred_element_type=jnp.float32) + bf2
    y = y + a

    # AvgPool1d(kernel=2, stride=2) over the feature axis as an MXU matmul.
    # NOTE: d_out < 128 at these demo sizes -> partial-lane store; for real dims
    # keep dim >= 256 (or pack outputs) to get unmasked lane-dense stores.
    return jnp.dot(y.astype(jnp.bfloat16), poolm,
                   preferred_element_type=jnp.float32)                 # (M, d_out)


# ---------------------------------------------------------------------------
# Kernel 1: threed_to_text fused with the first EchoBlock
# ---------------------------------------------------------------------------
def _fused_proj_block_kernel(x_ref, w1_ref, b1_ref, w2_ref, b2_ref,
                             wq3_ref, wk3_ref, wv3_ref, wo3_ref,
                             wf1_ref, bf1_ref, wf2_ref, bf2_ref,
                             mask_ref, pool_ref, o_ref, *, qk_scale):
    bt, f, sr = x_ref.shape
    d = w1_ref.shape[1]

    x = x_ref[...]                                                     # (bt, f, sr) bf16
    # h[b] = x[b] @ W1^T + b1  -> batch folded into rows for the MXU.
    h = jnp.dot(x.reshape(bt * f, sr), w1_ref[...],
                preferred_element_type=jnp.float32) + b1_ref[...]      # (bt*f, d)
    h3 = h.reshape(bt, f, d).astype(jnp.bfloat16)

    # g[b] = W2 @ h[b] + b2  as a batched einsum (W2 broadcast over the batch).
    w2b = jnp.broadcast_to(w2_ref[...], (bt, sr, f))
    g = jnp.einsum('bsf,bfd->bsd', w2b, h3,
                   preferred_element_type=jnp.float32)
    g = g + b2_ref[...][None, :, :]                                    # (bt, sr, d)

    tokens = g.reshape(bt * sr, d)                                     # (M, D)
    o_ref[...] = _attn_ffn_pool(
        tokens, wq3_ref[...], wk3_ref[...], wv3_ref[...], wo3_ref[...],
        wf1_ref[...], bf1_ref[...], wf2_ref[...], bf2_ref[...],
        mask_ref[...], pool_ref[...], qk_scale=qk_scale)


# ---------------------------------------------------------------------------
# Kernel 2: standalone EchoBlock (used for blocks after the first, depth > 1)
# ---------------------------------------------------------------------------
def _echo_block_kernel(x_ref, wq3_ref, wk3_ref, wv3_ref, wo3_ref,
                       wf1_ref, bf1_ref, wf2_ref, bf2_ref,
                       mask_ref, pool_ref, o_ref, *, qk_scale):
    o_ref[...] = _attn_ffn_pool(
        x_ref[...], wq3_ref[...], wk3_ref[...], wv3_ref[...], wo3_ref[...],
        wf1_ref[...], bf1_ref[...], wf2_ref[...], bf2_ref[...],
        mask_ref[...], pool_ref[...], qk_scale=qk_scale)


# ---------------------------------------------------------------------------
# Host-side helpers (plain JAX; run outside the kernels)
# ---------------------------------------------------------------------------
def _block_causal_mask(bt, n):
    """Additive mask (0 / -1e30) that is causal within each of bt length-n blocks
    and fully masked across blocks (keeps batches separate after row folding)."""
    idx = jnp.arange(bt * n)
    row, col = idx[:, None], idx[None, :]
    allowed = ((row // n) == (col // n)) & (col <= row)
    return jnp.where(allowed, 0.0, -1e30).astype(jnp.float32)


def _split_qkv_weight(w, heads, dim_head):
    # (D, H*Dh) -> (H, D, Dh)  (done on host so the kernel needs no lane reshapes)
    d = w.shape[0]
    return jnp.transpose(w.reshape(d, heads, dim_head), (1, 0, 2))


def _split_out_weight(w, heads, dim_head):
    # (H*Dh, D) -> (H, Dh, D)
    return w.reshape(heads, dim_head, w.shape[1])


_CONST2 = lambda i: (0, 0)
_CONST3 = lambda i: (0, 0, 0)


def _weight_specs(D, inner_h, dim_head, hidden, M, d_out, heads):
    """BlockSpecs for the block weights + mask + pool (constant across the grid)."""
    return [
        pl.BlockSpec((heads, D, dim_head), _CONST3),   # wq3
        pl.BlockSpec((heads, D, dim_head), _CONST3),   # wk3
        pl.BlockSpec((heads, D, dim_head), _CONST3),   # wv3
        pl.BlockSpec((heads, dim_head, D), _CONST3),   # wo3
        pl.BlockSpec((D, hidden), _CONST2),            # wf1
        pl.BlockSpec((1, hidden), _CONST2),            # bf1
        pl.BlockSpec((hidden, D), _CONST2),            # wf2
        pl.BlockSpec((1, D), _CONST2),                 # bf2
        pl.BlockSpec((M, M), _CONST2),                 # additive mask
        pl.BlockSpec((D, d_out), _CONST2),             # pool matrix
    ]


def _compiler_params():
    return pltpu.CompilerParams(
        dimension_semantics=("parallel",),
        vmem_limit_bytes=32 * 1024 * 1024,
    )


# ---------------------------------------------------------------------------
# pallas_call wrappers
# ---------------------------------------------------------------------------
def fused_proj_block_call(x, proj, blk, *, heads, dim_head, batch_block=None,
                          qk_scale=10.0):
    B, F, SR = x.shape
    bt = B if batch_block is None else batch_block
    assert B % bt == 0, (B, bt)
    nb = B // bt

    w1, b1, w2, b2 = proj
    wq, wk, wv, wo, wf1, bf1, wf2, bf2, poolm = blk
    D = w1.shape[1]
    hidden = wf1.shape[1]
    d_out = poolm.shape[1]
    M = bt * SR

    wq3 = _split_qkv_weight(wq, heads, dim_head)
    wk3 = _split_qkv_weight(wk, heads, dim_head)
    wv3 = _split_qkv_weight(wv, heads, dim_head)
    wo3 = _split_out_weight(wo, heads, dim_head)
    mask = _block_causal_mask(bt, SR)

    kern = functools.partial(_fused_proj_block_kernel, qk_scale=qk_scale)
    in_specs = [
        pl.BlockSpec((bt, F, SR), lambda i: (i, 0, 0)),   # x (batch-blocked)
        pl.BlockSpec((SR, D), _CONST2),                   # W1^T
        pl.BlockSpec((1, D), _CONST2),                    # b1
        pl.BlockSpec((SR, F), _CONST2),                   # W2
        pl.BlockSpec((SR, 1), _CONST2),                   # b2 (column)
    ] + _weight_specs(D, heads * dim_head, dim_head, hidden, M, d_out, heads)

    return pl.pallas_call(
        kern,
        out_shape=jax.ShapeDtypeStruct((B * SR, d_out), jnp.float32),
        grid=(nb,),
        in_specs=in_specs,
        out_specs=pl.BlockSpec((M, d_out), lambda i: (i, 0)),
        compiler_params=_compiler_params(),
    )(x, w1, b1, w2, b2, wq3, wk3, wv3, wo3, wf1, bf1, wf2, bf2, mask, poolm)


def echo_block_call(x2d, blk, *, n, heads, dim_head, batch_block=None,
                    qk_scale=10.0):
    rows, D = x2d.shape
    B = rows // n
    bt = B if batch_block is None else batch_block
    assert B % bt == 0, (B, bt)
    nb = B // bt

    wq, wk, wv, wo, wf1, bf1, wf2, bf2, poolm = blk
    hidden = wf1.shape[1]
    d_out = poolm.shape[1]
    M = bt * n

    wq3 = _split_qkv_weight(wq, heads, dim_head)
    wk3 = _split_qkv_weight(wk, heads, dim_head)
    wv3 = _split_qkv_weight(wv, heads, dim_head)
    wo3 = _split_out_weight(wo, heads, dim_head)
    mask = _block_causal_mask(bt, n)

    kern = functools.partial(_echo_block_kernel, qk_scale=qk_scale)
    in_specs = [pl.BlockSpec((M, D), lambda i: (i, 0))] + _weight_specs(
        D, heads * dim_head, dim_head, hidden, M, d_out, heads)

    return pl.pallas_call(
        kern,
        out_shape=jax.ShapeDtypeStruct((B * n, d_out), jnp.float32),
        grid=(nb,),
        in_specs=in_specs,
        out_specs=pl.BlockSpec((M, d_out), lambda i: (i, 0)),
        compiler_params=_compiler_params(),
    )(x2d, wq3, wk3, wv3, wo3, wf1, bf1, wf2, bf2, mask, poolm)


# ---------------------------------------------------------------------------
# Parameter setup (deterministic, in-script) and full forward
# ---------------------------------------------------------------------------
def init_params(key, *, dim, depth, heads, dim_head, ff_mult, f, sr,
                pool_kernel=2, stride=2):
    inner = heads * dim_head
    hidden = dim * ff_mult
    keys = jax.random.split(key, 4 + depth * 8)

    def w(k, shape, s=0.05, dtype=jnp.bfloat16):
        return (jax.random.normal(k, shape, jnp.float32) * s).astype(dtype)

    proj = (
        w(keys[0], (sr, dim)),                     # Linear(sr->dim).weight.T (bf16)
        w(keys[1], (1, dim), dtype=jnp.float32),   # its bias (f32)
        w(keys[2], (sr, f)),                       # Linear(f->sr).weight (bf16)
        w(keys[3], (sr, 1), dtype=jnp.float32),    # its bias, column (f32)
    )

    # fixed pooling matrix for AvgPool1d over the feature axis (0.5 exact in bf16)
    d_out = (dim - pool_kernel) // stride + 1
    cols = jnp.arange(d_out)
    poolm = jnp.zeros((dim, d_out), jnp.float32)
    for t in range(pool_kernel):
        poolm = poolm.at[cols * stride + t, cols].set(1.0 / pool_kernel)
    poolm = poolm.astype(jnp.bfloat16)

    blocks = []
    kidx = 4
    for _ in range(depth):   # as in the reference module, every block uses `dim`
        blk = (
            w(keys[kidx + 0], (dim, inner)),                  # Wq
            w(keys[kidx + 1], (dim, inner)),                  # Wk
            w(keys[kidx + 2], (dim, inner)),                  # Wv
            w(keys[kidx + 3], (inner, dim)),                  # Wo
            w(keys[kidx + 4], (dim, hidden)),                 # FFN W1
            w(keys[kidx + 5], (1, hidden), dtype=jnp.float32),
            w(keys[kidx + 6], (hidden, dim)),                 # FFN W2
            w(keys[kidx + 7], (1, dim), dtype=jnp.float32),
            poolm,
        )
        blocks.append(blk)
        kidx += 8
    return proj, blocks


def echo_pulse_forward(x, proj_params, block_params, *, heads, dim_head,
                       batch_block=None):
    b, f, s, r = x.shape
    sr = s * r
    x2 = x.reshape(b, f, sr).astype(jnp.bfloat16)   # 'b f s r -> b f (s r)'

    # threed_to_text fused with the first EchoBlock (no HBM round-trip).
    y = fused_proj_block_call(x2, proj_params, block_params[0],
                              heads=heads, dim_head=dim_head,
                              batch_block=batch_block)            # (b*sr, d_out)

    for blk in block_params[1:]:
        # NOTE: reference module builds every block with `dim`; depth > 1 only
        # shape-checks if the pooled dim still matches (same caveat as PyTorch).
        y = echo_block_call(y.astype(jnp.bfloat16), blk, n=sr, heads=heads,
                            dim_head=dim_head, batch_block=batch_block)

    return y.reshape(b, sr, -1)


if __name__ == "__main__":
    key = jax.random.PRNGKey(0)
    kx, kp = jax.random.split(key)

    # small shapes consistent with the module: input (b, f, s, r)
    B, F, S, R = 2, 8, 4, 4
    DIM, DEPTH, HEADS, DIM_HEAD, FF_MULT = 32, 1, 2, 16, 4   # depth=1 (pool halves dim)

    x = jax.random.normal(kx, (B, F, S, R), jnp.float32)
    proj, blocks = init_params(kp, dim=DIM, depth=DEPTH, heads=HEADS,
                               dim_head=DIM_HEAD, ff_mult=FF_MULT, f=F, sr=S * R)

    out = echo_pulse_forward(x, proj, blocks, heads=HEADS, dim_head=DIM_HEAD)
    jax.block_until_ready(out)
    assert out.shape == (B, S * R, DIM // 2), out.shape
    print("KERNEL_OK")
</pallas_src>

<mosaic_0001>
module attributes {stable_mosaic.version = 11 : i64} {
  func.func @_fused_proj_block_kernel(%arg0: i32, %arg1: memref<2x8x16xbf16, #tpu.memory_space<vmem>>, %arg2: memref<16x32xbf16, #tpu.memory_space<vmem>>, %arg3: memref<1x32xf32, #tpu.memory_space<vmem>>, %arg4: memref<16x8xbf16, #tpu.memory_space<vmem>>, %arg5: memref<16x1xf32, #tpu.memory_space<vmem>>, %arg6: memref<2x32x16xbf16, #tpu.memory_space<vmem>>, %arg7: memref<2x32x16xbf16, #tpu.memory_space<vmem>>, %arg8: memref<2x32x16xbf16, #tpu.memory_space<vmem>>, %arg9: memref<2x16x32xbf16, #tpu.memory_space<vmem>>, %arg10: memref<32x128xbf16, #tpu.memory_space<vmem>>, %arg11: memref<1x128xf32, #tpu.memory_space<vmem>>, %arg12: memref<128x32xbf16, #tpu.memory_space<vmem>>, %arg13: memref<1x32xf32, #tpu.memory_space<vmem>>, %arg14: memref<32x32xf32, #tpu.memory_space<vmem>>, %arg15: memref<32x16xbf16, #tpu.memory_space<vmem>>, %arg16: memref<32x16xf32, #tpu.memory_space<vmem>>) attributes {dimension_semantics = [#tpu.dimension_semantics<parallel>], iteration_bounds = array<i64: 1>, scalar_prefetch = 0 : i64, scratch_operands = 0 : i64, tpu.core_type = #tpu.core_type<tc>, window_params = [{transform_indices = @transform_0, window_bounds = array<i64: 2, 8, 16>}, {pipeline_mode = #tpu.pipeline_mode<synchronous>, transform_indices = @transform_1, window_bounds = array<i64: 16, 32>}, {pipeline_mode = #tpu.pipeline_mode<synchronous>, transform_indices = @transform_2, window_bounds = array<i64: 1, 32>}, {pipeline_mode = #tpu.pipeline_mode<synchronous>, transform_indices = @transform_3, window_bounds = array<i64: 16, 8>}, {pipeline_mode = #tpu.pipeline_mode<synchronous>, transform_indices = @transform_4, window_bounds = array<i64: 16, 1>}, {pipeline_mode = #tpu.pipeline_mode<synchronous>, transform_indices = @transform_5, window_bounds = array<i64: 2, 32, 16>}, {pipeline_mode = #tpu.pipeline_mode<synchronous>, transform_indices = @transform_6, window_bounds = array<i64: 2, 32, 16>}, {pipeline_mode = #tpu.pipeline_mode<synchronous>, transform_indices = @transform_7, window_bounds = array<i64: 2, 32, 16>}, {pipeline_mode = #tpu.pipeline_mode<synchronous>, transform_indices = @transform_8, window_bounds = array<i64: 2, 16, 32>}, {pipeline_mode = #tpu.pipeline_mode<synchronous>, transform_indices = @transform_9, window_bounds = array<i64: 32, 128>}, {pipeline_mode = #tpu.pipeline_mode<synchronous>, transform_indices = @transform_10, window_bounds = array<i64: 1, 128>}, {pipeline_mode = #tpu.pipeline_mode<synchronous>, transform_indices = @transform_11, window_bounds = array<i64: 128, 32>}, {pipeline_mode = #tpu.pipeline_mode<synchronous>, transform_indices = @transform_12, window_bounds = array<i64: 1, 32>}, {pipeline_mode = #tpu.pipeline_mode<synchronous>, transform_indices = @transform_13, window_bounds = array<i64: 32, 32>}, {pipeline_mode = #tpu.pipeline_mode<synchronous>, transform_indices = @transform_14, window_bounds = array<i64: 32, 16>}, {transform_indices = @transform_15, window_bounds = array<i64: 32, 16>}]} {
    %c0 = arith.constant 0 : index
    %c0_0 = arith.constant 0 : index
    %c0_1 = arith.constant 0 : index
    %0 = vector.load %arg1[%c0, %c0_0, %c0_1] : memref<2x8x16xbf16, #tpu.memory_space<vmem>>, vector<2x8x16xbf16>
    %1 = vector.shape_cast %0 : vector<2x8x16xbf16> to vector<16x16xbf16>
    %c0_2 = arith.constant 0 : index
    %c0_3 = arith.constant 0 : index
    %2 = vector.load %arg2[%c0_2, %c0_3] : memref<16x32xbf16, #tpu.memory_space<vmem>>, vector<16x32xbf16>
    %cst = arith.constant dense<0.000000e+00> : vector<16x32xf32>
    %3 = tpu.matmul %1, %2, %cst {dimension_numbers = #tpu.dot_dimension_numbers<[1], [0], [0], [1], [0, 0, 1, 1], [], []>} : vector<16x16xbf16>, vector<16x32xbf16>, vector<16x32xf32> -> vector<16x32xf32>
    %c0_4 = arith.constant 0 : index
    %c0_5 = arith.constant 0 : index
    %4 = vector.load %arg3[%c0_4, %c0_5] : memref<1x32xf32, #tpu.memory_space<vmem>>, vector<1x32xf32>
    %5 = vector.broadcast %4 : vector<1x32xf32> to vector<16x32xf32>
    %6 = arith.addf %3, %5 : vector<16x32xf32>
    %7 = vector.shape_cast %6 : vector<16x32xf32> to vector<2x8x32xf32>
    %8 = arith.truncf %7 : vector<2x8x32xf32> to vector<2x8x32xbf16>
    %c0_6 = arith.constant 0 : index
    %c0_7 = arith.constant 0 : index
    %9 = vector.load %arg4[%c0_6, %c0_7] : memref<16x8xbf16, #tpu.memory_space<vmem>>, vector<16x8xbf16>
    %10 = vector.shape_cast %9 : vector<16x8xbf16> to vector<1x16x8xbf16>
    %11 = vector.broadcast %10 : vector<1x16x8xbf16> to vector<2x16x8xbf16>
    "tpu.trace_start"() <{level = 10 : i32, message = "bsf,bfd->bsd"}> : () -> ()
    %cst_8 = arith.constant dense<0.000000e+00> : vector<2x16x32xf32>
    %12 = tpu.matmul %11, %8, %cst_8 {dimension_numbers = #tpu.dot_dimension_numbers<[2], [1], [1], [2], [0, 0, 0, 1, 1, 2], [0], [0]>} : vector<2x16x8xbf16>, vector<2x8x32xbf16>, vector<2x16x32xf32> -> vector<2x16x32xf32>
    "tpu.trace_stop"() : () -> ()
    %c0_9 = arith.constant 0 : index
    %c0_10 = arith.constant 0 : index
    %13 = vector.load %arg5[%c0_9, %c0_10] : memref<16x1xf32, #tpu.memory_space<vmem>>, vector<16x1xf32>
    %14 = vector.shape_cast %13 : vector<16x1xf32> to vector<1x16x1xf32>
    %15 = vector.broadcast %14 : vector<1x16x1xf32> to vector<2x16x32xf32>
    %16 = arith.addf %12, %15 : vector<2x16x32xf32>
    %17 = vector.shape_cast %16 : vector<2x16x32xf32> to vector<32x32xf32>
    %c0_11 = arith.constant 0 : index
    %c0_12 = arith.constant 0 : index
    %c0_13 = arith.constant 0 : index
    %18 = vector.load %arg6[%c0_11, %c0_12, %c0_13] : memref<2x32x16xbf16, #tpu.memory_space<vmem>>, vector<2x32x16xbf16>
    %c0_14 = arith.constant 0 : index
    %c0_15 = arith.constant 0 : index
    %c0_16 = arith.constant 0 : index
    %19 = vector.load %arg7[%c0_14, %c0_15, %c0_16] : memref<2x32x16xbf16, #tpu.memory_space<vmem>>, vector<2x32x16xbf16>
    %c0_17 = arith.constant 0 : index
    %c0_18 = arith.constant 0 : index
    %c0_19 = arith.constant 0 : index
    %20 = vector.load %arg8[%c0_17, %c0_18, %c0_19] : memref<2x32x16xbf16, #tpu.memory_space<vmem>>, vector<2x32x16xbf16>
    %c0_20 = arith.constant 0 : index
    %c0_21 = arith.constant 0 : index
    %c0_22 = arith.constant 0 : index
    %21 = vector.load %arg9[%c0_20, %c0_21, %c0_22] : memref<2x16x32xbf16, #tpu.memory_space<vmem>>, vector<2x16x32xbf16>
    %c0_23 = arith.constant 0 : index
    %c0_24 = arith.constant 0 : index
    %22 = vector.load %arg10[%c0_23, %c0_24] : memref<32x128xbf16, #tpu.memory_space<vmem>>, vector<32x128xbf16>
    %c0_25 = arith.constant 0 : index
    %c0_26 = arith.constant 0 : index
    %23 = vector.load %arg11[%c0_25, %c0_26] : memref<1x128xf32, #tpu.memory_space<vmem>>, vector<1x128xf32>
    %c0_27 = arith.constant 0 : index
    %c0_28 = arith.constant 0 : index
    %24 = vector.load %arg12[%c0_27, %c0_28] : memref<128x32xbf16, #tpu.memory_space<vmem>>, vector<128x32xbf16>
    %c0_29 = arith.constant 0 : index
    %c0_30 = arith.constant 0 : index
    %25 = vector.load %arg13[%c0_29, %c0_30] : memref<1x32xf32, #tpu.memory_space<vmem>>, vector<1x32xf32>
    %c0_31 = arith.constant 0 : index
    %c0_32 = arith.constant 0 : index
    %26 = vector.load %arg14[%c0_31, %c0_32] : memref<32x32xf32, #tpu.memory_space<vmem>>, vector<32x32xf32>
    %c0_33 = arith.constant 0 : index
    %c0_34 = arith.constant 0 : index
    %27 = vector.load %arg15[%c0_33, %c0_34] : memref<32x16xbf16, #tpu.memory_space<vmem>>, vector<32x16xbf16>
    %28 = arith.truncf %17 : vector<32x32xf32> to vector<32x32xbf16>
    %29 = vector.shape_cast %28 : vector<32x32xbf16> to vector<1x32x32xbf16>
    %30 = vector.shape_cast %29 : vector<1x32x32xbf16> to vector<1x32x32xbf16>
    %31 = vector.broadcast %30 : vector<1x32x32xbf16> to vector<2x32x32xbf16>
    "tpu.trace_start"() <{level = 10 : i32, message = "hmd,hde->hme"}> : () -> ()
    %cst_35 = arith.constant dense<0.000000e+00> : vector<2x32x16xf32>
    %32 = tpu.matmul %31, %18, %cst_35 {dimension_numbers = #tpu.dot_dimension_numbers<[2], [1], [1], [2], [0, 0, 0, 1, 1, 2], [0], [0]>} : vector<2x32x32xbf16>, vector<2x32x16xbf16>, vector<2x32x16xf32> -> vector<2x32x16xf32>
    %cst_36 = arith.constant dense<0.000000e+00> : vector<2x32x16xf32>
    %33 = tpu.matmul %31, %19, %cst_36 {dimension_numbers = #tpu.dot_dimension_numbers<[2], [1], [1], [2], [0, 0, 0, 1, 1, 2], [0], [0]>} : vector<2x32x32xbf16>, vector<2x32x16xbf16>, vector<2x32x16xf32> -> vector<2x32x16xf32>
    %cst_37 = arith.constant dense<0.000000e+00> : vector<2x32x16xf32>
    %34 = tpu.matmul %31, %20, %cst_37 {dimension_numbers = #tpu.dot_dimension_numbers<[2], [1], [1], [2], [0, 0, 0, 1, 1, 2], [0], [0]>} : vector<2x32x32xbf16>, vector<2x32x16xbf16>, vector<2x32x16xf32> -> vector<2x32x16xf32>
    "tpu.trace_stop"() : () -> ()
    %35 = arith.mulf %32, %32 : vector<2x32x16xf32>
    %cst_38 = arith.constant dense<0.000000e+00> : vector<2x32xf32>
    %36 = vector.multi_reduction <add>, %35, %cst_38 [2] : vector<2x32x16xf32> to vector<2x32xf32>
    %37 = vector.shape_cast %36 : vector<2x32xf32> to vector<2x32x1xf32>
    %cst_39 = arith.constant 9.99999996E-13 : f32
    %38 = vector.broadcast %cst_39 : f32 to vector<2x32x1xf32>
    %39 = arith.addf %37, %38 : vector<2x32x1xf32>
    %40 = math.rsqrt %39 : vector<2x32x1xf32>
    %41 = vector.broadcast %40 : vector<2x32x1xf32> to vector<2x32x16xf32>
    %42 = arith.mulf %32, %41 : vector<2x32x16xf32>
    %43 = arith.mulf %33, %33 : vector<2x32x16xf32>
    %cst_40 = arith.constant dense<0.000000e+00> : vector<2x32xf32>
    %44 = vector.multi_reduction <add>, %43, %cst_40 [2] : vector<2x32x16xf32> to vector<2x32xf32>
    %45 = vector.shape_cast %44 : vector<2x32xf32> to vector<2x32x1xf32>
    %cst_41 = arith.constant 9.99999996E-13 : f32
    %46 = vector.broadcast %cst_41 : f32 to vector<2x32x1xf32>
    %47 = arith.addf %45, %46 : vector<2x32x1xf32>
    %48 = math.rsqrt %47 : vector<2x32x1xf32>
    %49 = vector.broadcast %48 : vector<2x32x1xf32> to vector<2x32x16xf32>
    %50 = arith.mulf %33, %49 : vector<2x32x16xf32>
    %51 = arith.truncf %42 : vector<2x32x16xf32> to vector<2x32x16xbf16>
    %52 = arith.truncf %50 : vector<2x32x16xf32> to vector<2x32x16xbf16>
    "tpu.trace_start"() <{level = 10 : i32, message = "hne,hme->hnm"}> : () -> ()
    %cst_42 = arith.constant dense<0.000000e+00> : vector<2x32x32xf32>
    %53 = tpu.matmul %51, %52, %cst_42 {dimension_numbers = #tpu.dot_dimension_numbers<[2], [2], [1], [1], [0, 0, 0, 1, 1, 1], [0], [0]>} : vector<2x32x16xbf16>, vector<2x32x16xbf16>, vector<2x32x32xf32> -> vector<2x32x32xf32>
    "tpu.trace_stop"() : () -> ()
    %cst_43 = arith.constant 1.000000e+01 : f32
    %54 = vector.broadcast %cst_43 : f32 to vector<2x32x32xf32>
    %55 = arith.mulf %53, %54 : vector<2x32x32xf32>
    %56 = vector.shape_cast %26 : vector<32x32xf32> to vector<1x32x32xf32>
    %57 = vector.broadcast %56 : vector<1x32x32xf32> to vector<2x32x32xf32>
    %58 = arith.addf %55, %57 : vector<2x32x32xf32>
    %cst_44 = arith.constant dense<0xFF800000> : vector<2x32xf32>
    %59 = vector.multi_reduction <maximumf>, %58, %cst_44 [2] : vector<2x32x32xf32> to vector<2x32xf32>
    %60 = vector.shape_cast %59 : vector<2x32xf32> to vector<2x32x1xf32>
    %61 = vector.broadcast %60 : vector<2x32x1xf32> to vector<2x32x32xf32>
    %62 = arith.subf %58, %61 : vector<2x32x32xf32>
    %63 = math.exp %62 : vector<2x32x32xf32>
    %cst_45 = arith.constant dense<0.000000e+00> : vector<2x32xf32>
    %64 = vector.multi_reduction <add>, %63, %cst_45 [2] : vector<2x32x32xf32> to vector<2x32xf32>
    %65 = vector.shape_cast %64 : vector<2x32xf32> to vector<2x32x1xf32>
    %66 = tpu.reciprocal %65 {approx = true} : vector<2x32x1xf32> -> vector<2x32x1xf32>
    %67 = vector.broadcast %66 : vector<2x32x1xf32> to vector<2x32x32xf32>
    %68 = arith.mulf %63, %67 : vector<2x32x32xf32>
    %69 = arith.truncf %68 : vector<2x32x32xf32> to vector<2x32x32xbf16>
    %70 = arith.truncf %34 : vector<2x32x16xf32> to vector<2x32x16xbf16>
    "tpu.trace_start"() <{level = 10 : i32, message = "hnm,hme->hne"}> : () -> ()
    %cst_46 = arith.constant dense<0.000000e+00> : vector<2x32x16xf32>
    %71 = tpu.matmul %69, %70, %cst_46 {dimension_numbers = #tpu.dot_dimension_numbers<[2], [1], [1], [2], [0, 0, 0, 1, 1, 2], [0], [0]>} : vector<2x32x32xbf16>, vector<2x32x16xbf16>, vector<2x32x16xf32> -> vector<2x32x16xf32>
    "tpu.trace_stop"() : () -> ()
    %72 = arith.truncf %71 : vector<2x32x16xf32> to vector<2x32x16xbf16>
    "tpu.trace_start"() <{level = 10 : i32, message = "hne,hed->hnd"}> : () -> ()
    %cst_47 = arith.constant dense<0.000000e+00> : vector<2x32x32xf32>
    %73 = tpu.matmul %72, %21, %cst_47 {dimension_numbers = #tpu.dot_dimension_numbers<[2], [1], [1], [2], [0, 0, 0, 1, 1, 2], [0], [0]>} : vector<2x32x16xbf16>, vector<2x16x32xbf16>, vector<2x32x32xf32> -> vector<2x32x32xf32>
    "tpu.trace_stop"() : () -> ()
    %74 = vector.extract_strided_slice %73 {offsets = [0, 0, 0], sizes = [1, 32, 32], strides = [1, 1, 1]} : vector<2x32x32xf32> to vector<1x32x32xf32>
    %75 = vector.shape_cast %74 : vector<1x32x32xf32> to vector<32x32xf32>
    %76 = vector.extract_strided_slice %73 {offsets = [1, 0, 0], sizes = [1, 32, 32], strides = [1, 1, 1]} : vector<2x32x32xf32> to vector<1x32x32xf32>
    %77 = vector.shape_cast %76 : vector<1x32x32xf32> to vector<32x32xf32>
    %78 = arith.addf %75, %77 : vector<32x32xf32>
    %79 = arith.truncf %78 : vector<32x32xf32> to vector<32x32xbf16>
    %cst_48 = arith.constant dense<0.000000e+00> : vector<32x128xf32>
    %80 = tpu.matmul %79, %22, %cst_48 {dimension_numbers = #tpu.dot_dimension_numbers<[1], [0], [0], [1], [0, 0, 1, 1], [], []>} : vector<32x32xbf16>, vector<32x128xbf16>, vector<32x128xf32> -> vector<32x128xf32>
    %81 = vector.broadcast %23 : vector<1x128xf32> to vector<32x128xf32>
    %82 = arith.addf %80, %81 : vector<32x128xf32>
    %83 = arith.mulf %82, %82 : vector<32x128xf32>
    %84 = arith.mulf %82, %83 : vector<32x128xf32>
    %cst_49 = arith.constant 4.471500e-02 : f32
    %85 = vector.broadcast %cst_49 : f32 to vector<32x128xf32>
    %86 = arith.mulf %85, %84 : vector<32x128xf32>
    %87 = arith.addf %82, %86 : vector<32x128xf32>
    %cst_50 = arith.constant 0.797884583 : f32
    %88 = vector.broadcast %cst_50 : f32 to vector<32x128xf32>
    %89 = arith.mulf %88, %87 : vector<32x128xf32>
    %90 = math.tanh %89 : vector<32x128xf32>
    %cst_51 = arith.constant 1.000000e+00 : f32
    %91 = vector.broadcast %cst_51 : f32 to vector<32x128xf32>
    %92 = arith.addf %91, %90 : vector<32x128xf32>
    %cst_52 = arith.constant 5.000000e-01 : f32
    %93 = vector.broadcast %cst_52 : f32 to vector<32x128xf32>
    %94 = arith.mulf %93, %92 : vector<32x128xf32>
    %95 = arith.mulf %82, %94 : vector<32x128xf32>
    %96 = arith.truncf %95 : vector<32x128xf32> to vector<32x128xbf16>
    %cst_53 = arith.constant dense<0.000000e+00> : vector<32x32xf32>
    %97 = tpu.matmul %96, %24, %cst_53 {dimension_numbers = #tpu.dot_dimension_numbers<[1], [0], [0], [1], [0, 0, 1, 1], [], []>} : vector<32x128xbf16>, vector<128x32xbf16>, vector<32x32xf32> -> vector<32x32xf32>
    %98 = vector.broadcast %25 : vector<1x32xf32> to vector<32x32xf32>
    %99 = arith.addf %97, %98 : vector<32x32xf32>
    %100 = arith.addf %99, %78 : vector<32x32xf32>
    %101 = arith.truncf %100 : vector<32x32xf32> to vector<32x32xbf16>
    %cst_54 = arith.constant dense<0.000000e+00> : vector<32x16xf32>
    %102 = tpu.matmul %101, %27, %cst_54 {dimension_numbers = #tpu.dot_dimension_numbers<[1], [0], [0], [1], [0, 0, 1, 1], [], []>} : vector<32x32xbf16>, vector<32x16xbf16>, vector<32x16xf32> -> vector<32x16xf32>
    %c0_55 = arith.constant 0 : index
    %c0_56 = arith.constant 0 : index
    %103 = vector.load %arg16[%c0_55, %c0_56] : memref<32x16xf32, #tpu.memory_space<vmem>>, vector<32x16xf32>
    tpu.vector_store %arg16[%c0_55, %c0_56], %102 {strides = array<i32>} : memref<32x16xf32, #tpu.memory_space<vmem>>, vector<32x16xf32>,
    return
  }
  func.func @transform_0(%arg0: i32) -> (i32, i32, i32) {
    %c0_i32 = arith.constant 0 : i32
    %c0_i32_0 = arith.constant 0 : i32
    %c0_i32_1 = arith.constant 0 : i32
    return %arg0, %c0_i32, %c0_i32_0 : i32, i32, i32
  }
  func.func @transform_1(%arg0: i32) -> (i32, i32) {
    %c0_i32 = arith.constant 0 : i32
    %c0_i32_0 = arith.constant 0 : i32
    %c0_i32_1 = arith.constant 0 : i32
    return %c0_i32, %c0_i32_0 : i32, i32
  }
  func.func @transform_2(%arg0: i32) -> (i32, i32) {
    %c0_i32 = arith.constant 0 : i32
    %c0_i32_0 = arith.constant 0 : i32
    %c0_i32_1 = arith.constant 0 : i32
    return %c0_i32, %c0_i32_0 : i32, i32
  }
  func.func @transform_3(%arg0: i32) -> (i32, i32) {
    %c0_i32 = arith.constant 0 : i32
    %c0_i32_0 = arith.constant 0 : i32
    %c0_i32_1 = arith.constant 0 : i32
    return %c0_i32, %c0_i32_0 : i32, i32
  }
  func.func @transform_4(%arg0: i32) -> (i32, i32) {
    %c0_i32 = arith.constant 0 : i32
    %c0_i32_0 = arith.constant 0 : i32
    %c0_i32_1 = arith.constant 0 : i32
    return %c0_i32, %c0_i32_0 : i32, i32
  }
  func.func @transform_5(%arg0: i32) -> (i32, i32, i32) {
    %c0_i32 = arith.constant 0 : i32
    %c0_i32_0 = arith.constant 0 : i32
    %c0_i32_1 = arith.constant 0 : i32
    %c0_i32_2 = arith.constant 0 : i32
    return %c0_i32, %c0_i32_0, %c0_i32_1 : i32, i32, i32
  }
  func.func @transform_6(%arg0: i32) -> (i32, i32, i32) {
    %c0_i32 = arith.constant 0 : i32
    %c0_i32_0 = arith.constant 0 : i32
    %c0_i32_1 = arith.constant 0 : i32
    %c0_i32_2 = arith.constant 0 : i32
    return %c0_i32, %c0_i32_0, %c0_i32_1 : i32, i32, i32
  }
  func.func @transform_7(%arg0: i32) -> (i32, i32, i32) {
    %c0_i32 = arith.constant 0 : i32
    %c0_i32_0 = arith.constant 0 : i32
    %c0_i32_1 = arith.constant 0 : i32
    %c0_i32_2 = arith.constant 0 : i32
    return %c0_i32, %c0_i32_0, %c0_i32_1 : i32, i32, i32
  }
  func.func @transform_8(%arg0: i32) -> (i32, i32, i32) {
    %c0_i32 = arith.constant 0 : i32
    %c0_i32_0 = arith.constant 0 : i32
    %c0_i32_1 = arith.constant 0 : i32
    %c0_i32_2 = arith.constant 0 : i32
    return %c0_i32, %c0_i32_0, %c0_i32_1 : i32, i32, i32
  }
  func.func @transform_9(%arg0: i32) -> (i32, i32) {
    %c0_i32 = arith.constant 0 : i32
    %c0_i32_0 = arith.constant 0 : i32
    %c0_i32_1 = arith.constant 0 : i32
    return %c0_i32, %c0_i32_0 : i32, i32
  }
  func.func @transform_10(%arg0: i32) -> (i32, i32) {
    %c0_i32 = arith.constant 0 : i32
    %c0_i32_0 = arith.constant 0 : i32
    %c0_i32_1 = arith.constant 0 : i32
    return %c0_i32, %c0_i32_0 : i32, i32
  }
  func.func @transform_11(%arg0: i32) -> (i32, i32) {
    %c0_i32 = arith.constant 0 : i32
    %c0_i32_0 = arith.constant 0 : i32
    %c0_i32_1 = arith.constant 0 : i32
    return %c0_i32, %c0_i32_0 : i32, i32
  }
  func.func @transform_12(%arg0: i32) -> (i32, i32) {
    %c0_i32 = arith.constant 0 : i32
    %c0_i32_0 = arith.constant 0 : i32
    %c0_i32_1 = arith.constant 0 : i32
    return %c0_i32, %c0_i32_0 : i32, i32
  }
  func.func @transform_13(%arg0: i32) -> (i32, i32) {
    %c0_i32 = arith.constant 0 : i32
    %c0_i32_0 = arith.constant 0 : i32
    %c0_i32_1 = arith.constant 0 : i32
    return %c0_i32, %c0_i32_0 : i32, i32
  }
  func.func @transform_14(%arg0: i32) -> (i32, i32) {
    %c0_i32 = arith.constant 0 : i32
    %c0_i32_0 = arith.constant 0 : i32
    %c0_i32_1 = arith.constant 0 : i32
    return %c0_i32, %c0_i32_0 : i32, i32
  }
  func.func @transform_15(%arg0: i32) -> (i32, i32) {
    %c0_i32 = arith.constant 0 : i32
    %c0_i32_0 = arith.constant 0 : i32
    return %arg0, %c0_i32 : i32, i32
  }
}

</mosaic_0001>

<bundles_post_ra>
// kernel: tpu_custom_call.1
= control target key start
LH: loop header
LB: loop body
LE: loop exit
PB: predicated region body
PF: predicated region fallthrough
CT: control target
= control target key end

     0   :  { %v1944_v0 = vmov 0.0   ;;  %vm1945_vm0 = vmmov 0   ;;  %vm73_vm1 = vcmask 130048   ;;  %v1946_v3 = vmov 0   ;;  %s2322_s1 = inlined_call_operand.vmem [shape: bf16[16,32], index: 1, kind: input, shape index: {}]   ;;  %s2323_s0 = inlined_call_operand.vmem [shape: bf16[2,8,16], index: 0, kind: input, shape index: {}]   ;;  %s2324_s3 = inlined_call_operand.vmem [shape: bf16[16,8], index: 3, kind: input, shape index: {}]   ;;  %s2325_s4 = inlined_call_operand.vmem [shape: f32[16,1], index: 4, kind: input, shape index: {}]   ;;  %s2326_s2 = inlined_call_operand.vmem [shape: f32[1,32], index: 2, kind: input, shape index: {}]   ;;  %s2327_s5 = inlined_call_operand.vmem [shape: bf16[2,32,16], index: 5, kind: input, shape index: {}]   ;;  %s2328_s6 = inlined_call_operand.vmem [shape: bf16[2,32,16], index: 6, kind: input, shape index: {}]   ;;  %s2329_s7 = inlined_call_operand.vmem [shape: bf16[2,32,16], index: 7, kind: input, shape index: {}]   ;;  %s2330_s13 = inlined_call_operand.vmem [shape: f32[32,32], index: 13, kind: input, shape index: {}]   ;;  %s2331_s8 = inlined_call_operand.vmem [shape: bf16[2,16,32], index: 8, kind: input, shape index: {}]   ;;  %s2332_s9 = inlined_call_operand.vmem [shape: bf16[32,128], index: 9, kind: input, shape index: {}]   ;;  %s2333_s11 = inlined_call_operand.vmem [shape: bf16[128,32], index: 11, kind: input, shape index: {}]   ;;  %s2334_s10 = inlined_call_operand.vmem [shape: f32[1,128], index: 10, kind: input, shape index: {}]   ;;  %s2335_s14 = inlined_call_operand.vmem [shape: bf16[32,16], index: 14, kind: input, shape index: {}]   ;;  %s2336_s12 = inlined_call_operand.vmem [shape: f32[1,32], index: 12, kind: input, shape index: {}]   ;;  %s2337_s15 = inlined_call_operand.vmem [shape: f32[32,16], index: 15, kind: output, shape index: {}]  }
   0x1   :  { %1689 = vmatprep.subr.bf16.mxu1 %v1944_v0  ;;  %v1843_v1 = vld [vmem:[%s2322_s1] sm:$0xff]   ;;  %1691 = vmatprep.mubr.msk.bf16.mxu1 %vm1945_vm0, %v1944_v0  ;;  %v123_v5 = vld [vmem:[%s2325_s4 + $0x8] sm:$0xff]  ;;  %vm143_vm2 = vcmask 1043456   ;;  %vm139_vm3 = vcmask 64512   ;;  %v1847_v19 = vld [vmem:[%s2327_s5 + $0x18] sm:$0xff]   ;;  %vm304_vm4 = vcmask 261120  }
   0x2   :  { %v1844_v2 = vld [vmem:[%s2323_s0] sm:$0xff]   ;;  %1701 = vmatprep.subr.bf16.mxu0 %v1944_v0  ;;  %1703 = vmatprep.mubr.msk.bf16.mxu0 %vm1945_vm0, %v1944_v0  ;;  %v1846_v18 = vld [vmem:[%s2327_s5 + $0x8] sm:$0xff]   ;;  %v1849_v21 = vld [vmem:[%s2327_s5 + $0x10] sm:$0xff]  }
   0x3   :  { %1690 = vmatpush3.bf16.msra.mxu1 %v1843_v1  ;;  %1842 = vset.pattern.permute.xlu0 %v1946_v3  ;;  %v122_v4 = vld [vmem:[%s2325_s4] sm:$0xff]  ;;  %v1850_v22 = vld [vmem:[%s2328_s6 + $0x8] sm:$0xff]   ;;  %v1851_v23 = vld [vmem:[%s2328_s6 + $0x18] sm:$0xff]  }
   0x4   :  { %1695 = vmatprep.subr.bf16.mxu1 %v1944_v0  ;;  %126 = vperm.xlu0 %1842, %v122_v4   ;;  %v1556_v6 = vld [vmem:[%s2326_s2] ss:$0 sm:$0xff]  ;;  %v1853_v41 = vld [vmem:[%s2328_s6 + $0x10] sm:$0xff]   ;;  %v1854_v42 = vld [vmem:[%s2329_s7 + $0x8] sm:$0xff]  }
   0x5   :  { %v1845_v14 = vld [vmem:[%s2324_s3] sm:$0xff]   ;;  %v1855_v43 = vld [vmem:[%s2329_s7 + $0x18] sm:$0xff]   ;;  %v1857_v45 = vld [vmem:[%s2329_s7 + $0x10] sm:$0xff]  }
   0x6   :  { %1692 = vmatmul.mubr.msk.bf16.vlgmr.msra.gmra.mxu1 %vm73_vm1, %v1844_v2  ;;  %v1848_v20 = vld [vmem:[%s2327_s5] sm:$0xff]  }
   0x7   :  { %1697 = vmatprep.mubr.msk.bf16.mxu1 %vm1945_vm0, %v1944_v0  ;;  %v1852_v40 = vld [vmem:[%s2328_s6] sm:$0xff]  }
   0x8   :  { %131 = vperm.xlu0 %1842, %v123_v5   ;;  %v1856_v44 = vld [vmem:[%s2329_s7] sm:$0xff]  }
  0x7f   :  { %v127_v24 = vpop.permute.xlu0 %126 }
  0x83   :  { %v132_v27 = vpop.permute.xlu0 %131 }
  0xc6   :  { %v111_v7 = vpop.f32.mrf.mxu1 }
  0xc7   :  { %v112_v8 = vadd.f32 %v1556_v6, %v111_v7 }
  0xc8   :  { %v1693_v9 = vpop.f32.mrf.mxu1 }
  0xc9   :  { %v118_v10 = vpack.c.bf16 %v112_v8, %v112_v8 }
  0xca   :  { %v114_v11 = vpop.f32.mrf.mxu1 }
  0xcb   :  { %v145_v12 = vsel %vm143_vm2, %v118_v10, 0  ;;  %v115_v13 = vadd.f32 %v1556_v6, %v114_v11 }
  0xcc   :  { %v1694_v15 = vpop.f32.mrf.mxu1  ;;  %1696 = vmatpush3.bf16.msra.mxu1 %v145_v12 }
  0xcd   :  { %v119_v16 = vpack.c.bf16 %v115_v13, %v115_v13  ;;  %1707 = vmatprep.subr.bf16.mxu1 %v1846_v18 }
  0xcf   :  { %1698 = vmatmul.mubr.msk.bf16.vlgmr.msra.gmra.mxu1 %vm139_vm3, %v1845_v14  ;;  %v189_v17 = vsel %vm143_vm2, %v119_v16, 0 }
  0xd0   :  { %1702 = vmatpush3.bf16.msra.mxu0 %v189_v17  ;;  %1708 = vmatpush3.bf16.msra.mxu1 %v1846_v18 }
  0xd1   :  { %1715 = vmatprep.subr.bf16.mxu0 %v1847_v19  ;;  %1709 = vmatprep.subr.bf16.mxu1 %v1848_v20 }
  0xd3   :  { %1704 = vmatmul.mubr.msk.bf16.vlgmr.msra.gmra.mxu0 %vm139_vm3, %v1845_v14 }
  0xd4   :  { %1716 = vmatpush3.bf16.msra.mxu0 %v1847_v19  ;;  %1710 = vmatpush3.bf16.msra.mxu1 %v1848_v20 }
  0xd5   :  { %1717 = vmatprep.subr.bf16.mxu0 %v1849_v21  ;;  %1723 = vmatprep.subr.bf16.mxu1 %v1850_v22 }
  0xd8   :  { %1718 = vmatpush3.bf16.msra.mxu0 %v1849_v21 }
  0xd9   :  { %1731 = vmatprep.subr.bf16.mxu0 %v1851_v23 }
 0x18f   :  { %v181_v25 = vpop.f32.mrf.mxu1 }
 0x190   :  { %v182_v28 = vadd.f32 %v181_v25, %v127_v24 }
 0x191   :  { %v1699_v26 = vpop.f32.mrf.mxu1 }
 0x193   :  { %v184_v29 = vpop.f32.mrf.mxu1  ;;  %v225_v30 = vpop.f32.mrf.mxu0 }
 0x194   :  { %v185_v31 = vadd.f32 %v184_v29, %v132_v27  ;;  %v226_v36 = vadd.f32 %v225_v30, %v127_v24 }
 0x195   :  { %v1700_v32 = vpop.f32.mrf.mxu1  ;;  %v1705_v33 = vpop.f32.mrf.mxu0 }
 0x196   :  { %v290_v34 = vpack.c.bf16 %v185_v31, %v182_v28 }
 0x197   :  { %v228_v35 = vpop.f32.mrf.mxu0 }
 0x198   :  { %v229_v37 = vadd.f32 %v228_v35, %v132_v27  ;;  %1711 = vmatprep.mubr.msk.bf16.mxu1 %vm304_vm4, %v290_v34  ;;  %1719 = vmatprep.mubr.msk.bf16.mxu0 %vm304_vm4, %v290_v34 }
 0x199   :  { %v1706_v38 = vpop.f32.mrf.mxu0 }
 0x19a   :  { %v291_v39 = vpack.c.bf16 %v229_v37, %v226_v36 }
 0x19c   :  { %1712 = vmatmul.mubr.msk.bf16.vlgmr.msra.gmra.mxu1 %vm304_vm4, %v291_v39  ;;  %1720 = vmatmul.mubr.msk.bf16.vlgmr.msra.gmra.mxu0 %vm304_vm4, %v291_v39 }
 0x19d   :  { %1724 = vmatpush3.bf16.msra.mxu1 %v1850_v22  ;;  %1727 = vmatprep.mubr.msk.bf16.mxu1 %vm304_vm4, %v290_v34 }
 0x19e   :  { %1732 = vmatpush3.bf16.msra.mxu0 %v1851_v23  ;;  %1735 = vmatprep.mubr.msk.bf16.mxu0 %vm304_vm4, %v290_v34 }
 0x19f   :  { %1725 = vmatprep.subr.bf16.mxu1 %v1852_v40  ;;  %1733 = vmatprep.subr.bf16.mxu0 %v1853_v41 }
 0x1a1   :  { %1726 = vmatpush3.bf16.msra.mxu1 %v1852_v40 }
 0x1a2   :  { %1734 = vmatpush3.bf16.msra.mxu0 %v1853_v41  ;;  %1739 = vmatprep.subr.bf16.mxu1 %v1854_v42 }
 0x1a3   :  { %1747 = vmatprep.subr.bf16.mxu0 %v1855_v43 }
 0x1a4   :  { %1728 = vmatmul.mubr.msk.bf16.vlgmr.msra.gmra.mxu1 %vm304_vm4, %v291_v39 }
 0x1a5   :  { %1736 = vmatmul.mubr.msk.bf16.vlgmr.msra.gmra.mxu0 %vm304_vm4, %v291_v39  ;;  %1740 = vmatpush3.bf16.msra.mxu1 %v1854_v42 }
 0x1a6   :  { %1743 = vmatprep.mubr.msk.bf16.mxu1 %vm304_vm4, %v290_v34  ;;  %1748 = vmatpush3.bf16.msra.mxu0 %v1855_v43 }
 0x1a7   :  { %1751 = vmatprep.mubr.msk.bf16.mxu0 %vm304_vm4, %v290_v34  ;;  %1741 = vmatprep.subr.bf16.mxu1 %v1856_v44 }
 0x1a8   :  { %1749 = vmatprep.subr.bf16.mxu0 %v1857_v45 }
 0x1a9   :  { %1742 = vmatpush3.bf16.msra.mxu1 %v1856_v44 }
 0x1aa   :  { %1750 = vmatpush3.bf16.msra.mxu0 %v1857_v45 }
 0x1ac   :  { %1744 = vmatmul.mubr.msk.bf16.vlgmr.msra.gmra.mxu1 %vm304_vm4, %v291_v39 }
 0x1ad   :  { %1752 = vmatmul.mubr.msk.bf16.vlgmr.msra.gmra.mxu0 %vm304_vm4, %v291_v39 }
 0x25c   :  { %v2094_v46 = vpop.f32.mrf.mxu1  ;;  %v2096_v47 = vpop.f32.mrf.mxu0 }
 0x25d   :  { %v667_v25 = vmul.f32 %v2094_v46, %v2094_v46  ;;  %v671_v27 = vmul.f32 %v2096_v47, %v2096_v47 }
 0x25e   :  { %v2098_v48 = vpop.f32.mrf.mxu1  ;;  %v2100_v49 = vpop.f32.mrf.mxu0 }
 0x25f   :  { %v665_v58 = vmul.f32 %v2098_v48, %v2098_v48  ;;  %v669_v2 = vmul.f32 %v2100_v49, %v2100_v49  ;;  %v679_v28 = vsel %vm73_vm1, %v667_v25, 0.0  ;;  %v691_v29 = vsel %vm73_vm1, %v671_v27, 0.0 }
 0x260   :  { %v2102_v50 = vpop.f32.mrf.mxu1  ;;  %v2104_v51 = vpop.f32.mrf.mxu0 }
 0x261   :  { %v673_v63 = vsel %vm73_vm1, %v665_v58, 0.0  ;;  %v668_v0 = vmul.f32 %v2102_v50, %v2102_v50  ;;  %v672_v4 = vmul.f32 %v2104_v51, %v2104_v51  ;;  %v685_v8 = vsel %vm73_vm1, %v669_v2, 0.0 }
 0x262   :  { %v2106_v52 = vpop.f32.mrf.mxu1  ;;  %v2108_v53 = vpop.f32.mrf.mxu0 }
 0x263   :  { %v670_v60 = vmul.f32 %v2108_v53, %v2108_v53  ;;  %v666_v62 = vmul.f32 %v2106_v52, %v2106_v52  ;;  %v682_v6 = vsel %vm73_vm1, %v668_v0, 0.0  ;;  %v694_v10 = vsel %vm73_vm1, %v672_v4, 0.0 }
 0x264   :  { %v2110_v54 = vpop.f32.mrf.mxu1 }
 0x265   :  { %v2112_v55 = vpop.f32.mrf.mxu0  ;;  %v723_v56 = vmul.f32 %v2110_v54, %v2110_v54  ;;  %v688_v1 = vsel %vm73_vm1, %v670_v60, 0.0  ;;  %v676_v3 = vsel %vm73_vm1, %v666_v62, 0.0 }
 0x266   :  { %v727_v57 = vmul.f32 %v2112_v55, %v2112_v55  ;;  %v2135_v5 = vpop.f32.mrf.mxu1 }
 0x267   :  { %v735_v59 = vsel %vm73_vm1, %v723_v56, 0.0  ;;  %v721_v7 = vmul.f32 %v2135_v5, %v2135_v5  ;;  %v2141_v9 = vpop.f32.mrf.mxu0 }
 0x268   :  { %v747_v61 = vsel %vm73_vm1, %v727_v57, 0.0  ;;  %736 = vadd.xlane.f32.xlu1 %v735_v59  ;;  %v725_v11 = vmul.f32 %v2141_v9, %v2141_v9  ;;  %v2147_v13 = vpop.f32.mrf.mxu1 }
 0x269   :  { %748 = vadd.xlane.f32.xlu0 %v747_v61  ;;  %v729_v12 = vsel %vm73_vm1, %v721_v7, 0.0  ;;  %v724_v14 = vmul.f32 %v2147_v13, %v2147_v13  ;;  %v2152_v16 = vpop.f32.mrf.mxu0 }
 0x26a   :  { %v741_v15 = vsel %vm73_vm1, %v725_v11, 0.0  ;;  %v728_v17 = vmul.f32 %v2152_v16, %v2152_v16  ;;  %v2157_v19 = vpop.f32.mrf.mxu1 }
 0x26b   :  { %v738_v18 = vsel %vm73_vm1, %v724_v14, 0.0  ;;  %v722_v20 = vmul.f32 %v2157_v19, %v2157_v19  ;;  %v2162_v22 = vpop.f32.mrf.mxu0 }
 0x26c   :  { %674 = vadd.xlane.f32.xlu1 %v673_v63  ;;  %v750_v21 = vsel %vm73_vm1, %v728_v17, 0.0  ;;  %v726_v23 = vmul.f32 %v2162_v22, %v2162_v22 }
 0x26d   :  { %689 = vadd.xlane.f32.xlu0 %v688_v1  ;;  %v732_v24 = vsel %vm73_vm1, %v722_v20, 0.0 }
 0x26e   :  { %v744_v26 = vsel %vm73_vm1, %v726_v23, 0.0  ;;  %v1745_v23 = vpop.f32.mrf.mxu1 }
 0x270   :  { %677 = vadd.xlane.f32.xlu1 %v676_v3 }
 0x271   :  { %683 = vadd.xlane.f32.xlu0 %v682_v6 }
 0x274   :  { %686 = vadd.xlane.f32.xlu1 %v685_v8 }
 0x275   :  { %695 = vadd.xlane.f32.xlu0 %v694_v10 }
 0x278   :  { %730 = vadd.xlane.f32.xlu1 %v729_v12 }
 0x27c   :  { %742 = vadd.xlane.f32.xlu1 %v741_v15 }
 0x280   :  { %739 = vadd.xlane.f32.xlu1 %v738_v18 }
 0x284   :  { %751 = vadd.xlane.f32.xlu1 %v750_v21 }
 0x288   :  { %733 = vadd.xlane.f32.xlu1 %v732_v24 }
 0x28c   :  { %745 = vadd.xlane.f32.xlu1 %v744_v26 }
 0x290   :  { %680 = vadd.xlane.f32.xlu1 %v679_v28 }
 0x294   :  { %692 = vadd.xlane.f32.xlu1 %v691_v29 }
 0x2f1   :  { %v737_v30 = vpop.xlane.xlu1 %736 }
 0x2f2   :  { %v749_v31 = vpop.xlane.xlu0 %748  ;;  %v755_v42 = vadd.f32 1e-12, %v737_v30 }
 0x2f3   :  { %v759_v45 = vadd.f32 1e-12, %v749_v31 }
 0x2f5   :  { %v675_v32 = vpop.xlane.xlu1 %674 }
 0x2f6   :  { %v697_v33 = vadd.f32 1e-12, %v675_v32  ;;  %v690_v34 = vpop.xlane.xlu0 %689  ;;  %v1753_v32 = vpop.f32.mrf.mxu0 }
 0x2f7   :  { %v702_v36 = vadd.f32 1e-12, %v690_v34 }
 0x2f8   :  { %1872 = vrsqrt.f32 %v697_v33 }
 0x2f9   :  { %v678_v35 = vpop.xlane.xlu1 %677 }
 0x2fa   :  { %v698_v37 = vadd.f32 1e-12, %v678_v35  ;;  %v684_v4 = vpop.xlane.xlu0 %683 }
 0x2fb   :  { %v700_v10 = vadd.f32 1e-12, %v684_v4 }
 0x2fc   :  { %1874 = vrsqrt.f32 %v698_v37 }
 0x2fd   :  { %v687_v38 = vpop.xlane.xlu1 %686  ;;  %1876 = vrsqrt.f32 %v702_v36 }
 0x2fe   :  { %v701_v39 = vadd.f32 1e-12, %v687_v38  ;;  %v696_v11 = vpop.xlane.xlu0 %695  ;;  %v650_v38 = vpop.f32.mrf.mxu0 }
 0x2ff   :  { %v704_v15 = vadd.f32 1e-12, %v696_v11 }
 0x300   :  { %1878 = vrsqrt.f32 %v701_v39 }
 0x301   :  { %v731_v40 = vpop.xlane.xlu1 %730  ;;  %1880 = vrsqrt.f32 %v755_v42 }
 0x302   :  { %v753_v0 = vadd.f32 1e-12, %v731_v40 }
 0x305   :  { %v743_v41 = vpop.xlane.xlu1 %742  ;;  %v1873_v43 = vpop.eup %1872 }
 0x306   :  { %v713_v58 = vmul.f32 %v1873_v43, %v2098_v48 }
 0x309   :  { %v1875_v44 = vpop.eup %1874  ;;  %v740_v56 = vpop.xlane.xlu1 %739 }
 0x30a   :  { %v756_v57 = vadd.f32 1e-12, %v740_v56  ;;  %v714_v59 = vmul.f32 %v1875_v44, %v2106_v52  ;;  %v1877_v60 = vpop.eup %1876  ;;  %v757_v52 = vadd.f32 1e-12, %v743_v41 }
 0x30b   :  { %v718_v3 = vmul.f32 %v1877_v60, %v2108_v53 }
 0x30c   :  { %1882 = vrsqrt.f32 %v756_v57  ;;  %v777_v61 = vpack.c.bf16 %v714_v59, %v713_v58 }
 0x30d   :  { %v1879_v62 = vpop.eup %1878  ;;  %1884 = vrsqrt.f32 %v759_v45  ;;  %v752_v63 = vpop.xlane.xlu1 %751 }
 0x30e   :  { %v760_v1 = vadd.f32 1e-12, %v752_v63  ;;  %1759 = vmatprep.mubr.msk.bf16.mxu1 %vm73_vm1, %v777_v61  ;;  %v717_v2 = vmul.f32 %v1879_v62, %v2100_v49  ;;  %v1881_v14 = vpop.eup %1880  ;;  %v1754_v45 = vpop.f32.mrf.mxu0 }
 0x30f   :  { %v771_v20 = vmul.f32 %v1881_v14, %v2110_v54  ;;  %v589_v54 = vpop.f32.mrf.mxu1  ;;  %v1018_v57 = vpack.c.bf16 %v1754_v45, %v1753_v32 }
 0x310   :  { %1886 = vrsqrt.f32 %v760_v1  ;;  %v779_v6 = vpack.c.bf16 %v718_v3, %v717_v2  ;;  %v653_v1 = vpop.f32.mrf.mxu0 }
 0x311   :  { %v734_v48 = vpop.xlane.xlu1 %733  ;;  %1888 = vrsqrt.f32 %v753_v0  ;;  %v1017_v3 = vpack.c.bf16 %v653_v1, %v650_v38 }
 0x312   :  { %v754_v7 = vadd.f32 1e-12, %v734_v48  ;;  %1767 = vmatprep.mubr.msk.bf16.mxu0 %vm73_vm1, %v779_v6 }
 0x314   :  { %1890 = vrsqrt.f32 %v754_v7 }
 0x315   :  { %v746_v8 = vpop.xlane.xlu1 %745  ;;  %1892 = vrsqrt.f32 %v757_v52 }
 0x316   :  { %v758_v12 = vadd.f32 1e-12, %v746_v8  ;;  %v285_v8 = vld [vmem:[%s2330_s13 + $0x18] sm:$0xff] }
 0x318   :  { %1894 = vrsqrt.f32 %v758_v12 }
 0x319   :  { %v1883_v49 = vpop.eup %1882  ;;  %v681_v53 = vpop.xlane.xlu1 %680  ;;  %1896 = vrsqrt.f32 %v700_v10 }
 0x31a   :  { %v1885_v17 = vpop.eup %1884  ;;  %v699_v18 = vadd.f32 1e-12, %v681_v53  ;;  %v772_v21 = vmul.f32 %v1883_v49, %v2147_v13 }
 0x31b   :  { %v775_v29 = vmul.f32 %v1885_v17, %v2112_v55  ;;  %v1746_v55 = vpop.f32.mrf.mxu1 }
 0x31c   :  { %1898 = vrsqrt.f32 %v699_v18  ;;  %v782_v24 = vpack.c.bf16 %v772_v21, %v771_v20  ;;  %v1016_v40 = vpack.c.bf16 %v1746_v55, %v1745_v23 }
 0x31d   :  { %v1887_v25 = vpop.eup %1886  ;;  %1900 = vrsqrt.f32 %v704_v15  ;;  %v693_v26 = vpop.xlane.xlu1 %692  ;;  %v283_v15 = vld [vmem:[%s2330_s13 + $0x8] sm:$0xff] }
 0x31e   :  { %v703_v27 = vadd.f32 1e-12, %v693_v26  ;;  %1835 = vmatprep.subr.msk.bf16.mxu1 %vm73_vm1, %v782_v24  ;;  %v795_v28 = vsel %vm73_vm1, %v782_v24, 0  ;;  %v776_v30 = vmul.f32 %v1887_v25, %v2152_v16  ;;  %v1889_v31 = vpop.eup %1888  ;;  %v592_v61 = vpop.f32.mrf.mxu1 }
 0x31f   :  { %1756 = vmatpush3.bf16.xpose.msra.mxu1 %v795_v28  ;;  %v769_v35 = vmul.f32 %v1889_v31, %v2135_v5  ;;  %v1015_v62 = vpack.c.bf16 %v592_v61, %v589_v54 }
 0x320   :  { %1902 = vrsqrt.f32 %v703_v27  ;;  %v784_v13 = vpack.c.bf16 %v776_v30, %v775_v29 }
 0x321   :  { %v1891_v33 = vpop.eup %1890 }
 0x322   :  { %1837 = vmatprep.subr.msk.bf16.mxu0 %vm73_vm1, %v784_v13  ;;  %v856_v34 = vsel %vm73_vm1, %v784_v13, 0  ;;  %v770_v36 = vmul.f32 %v1891_v33, %v2157_v19  ;;  %v1893_v37 = vpop.eup %1892 }
 0x323   :  { %1764 = vmatpush3.bf16.xpose.msra.mxu0 %v856_v34  ;;  %v773_v42 = vmul.f32 %v1893_v37, %v2141_v9 }
 0x324   :  { %v781_v16 = vpack.c.bf16 %v770_v36, %v769_v35 }
 0x325   :  { %v1895_v39 = vpop.eup %1894 }
 0x326   :  { %1836 = vmatprep.subr.msk.bf16.mxu1 %vm73_vm1, %v781_v16  ;;  %v792_v41 = vsel %vm73_vm1, %v781_v16, 0  ;;  %v774_v43 = vmul.f32 %v1895_v39, %v2162_v22  ;;  %v1897_v44 = vpop.eup %1896 }
 0x327   :  { %1758 = vmatpush3.bf16.xpose.msra.mxu1 %v792_v41  ;;  %v716_v60 = vmul.f32 %v1897_v44, %v2102_v50  ;;  %v284_v50 = vld [vmem:[%s2330_s13 + $0x10] sm:$0xff] }
 0x328   :  { %1771 = vmatprep.subr.bf16.mxu1 %v1016_v40  ;;  %v783_v5 = vpack.c.bf16 %v774_v43, %v773_v42 }
 0x329   :  { %v1899_v19 = vpop.eup %1898 }
 0x32a   :  { %v1901_v56 = vpop.eup %1900  ;;  %1838 = vmatprep.subr.msk.bf16.mxu0 %vm73_vm1, %v783_v5  ;;  %v853_v58 = vsel %vm73_vm1, %v783_v5, 0  ;;  %v715_v59 = vmul.f32 %v1899_v19, %v2094_v46 }
 0x32b   :  { %1766 = vmatpush3.bf16.xpose.msra.mxu0 %v853_v58  ;;  %v720_v0 = vmul.f32 %v1901_v56, %v2104_v51  ;;  %v282_v51 = vld [vmem:[%s2330_s13] sm:$0xff] }
 0x32c   :  { %1779 = vmatprep.subr.bf16.mxu0 %v1018_v57  ;;  %v778_v9 = vpack.c.bf16 %v716_v60, %v715_v59 }
 0x32d   :  { %v1903_v22 = vpop.eup %1902 }
 0x32e   :  { %1760 = vmatmul.mubr.msk.bf16.vlgmr.msra.gmra.mxu1 %vm73_vm1, %v778_v9  ;;  %v719_v63 = vmul.f32 %v1903_v22, %v2096_v47 }
 0x32f   :  { %1772 = vmatpush3.bf16.msra.mxu1 %v1016_v40 }
 0x330   :  { %1773 = vmatprep.subr.bf16.mxu1 %v1015_v62  ;;  %v780_v2 = vpack.c.bf16 %v720_v0, %v719_v63 }
 0x332   :  { %1768 = vmatmul.mubr.msk.bf16.vlgmr.msra.gmra.mxu0 %vm73_vm1, %v780_v2 }
 0x333   :  { %1774 = vmatpush3.bf16.msra.mxu1 %v1015_v62  ;;  %1780 = vmatpush3.bf16.msra.mxu0 %v1018_v57 }
 0x334   :  { %1781 = vmatprep.subr.bf16.mxu0 %v1017_v3 }
 0x337   :  { %1782 = vmatpush3.bf16.msra.mxu0 %v1017_v3 }
 0x3ee   :  { %v1761_v46 = vpop.f32.mrf.mxu1 }
 0x3ef   :  { %v909_v4 = vmul.f32 10.0, %v1761_v46 }
 0x3f0   :  { %v831_v47 = vpop.f32.mrf.mxu1 }
 0x3f1   :  { %v907_v6 = vmul.f32 10.0, %v831_v47  ;;  %v917_v48 = vadd.f32 %v909_v4, %v284_v50 }
 0x3f2   :  { %v1762_v52 = vpop.f32.mrf.mxu1  ;;  %v1769_v7 = vpop.f32.mrf.mxu0 }
 0x3f3   :  { %v910_v10 = vmul.f32 10.0, %v1762_v52  ;;  %v929_v11 = vsel %vm304_vm4, %v917_v48, -inf  ;;  %v915_v12 = vadd.f32 %v907_v6, %v282_v51  ;;  %v913_v20 = vmul.f32 10.0, %v1769_v7 }
 0x3f4   :  { %v892_v14 = vpop.f32.mrf.mxu0  ;;  %930 = vmax.xlane.f32.xlu1 %v929_v11  ;;  %v834_v49 = vpop.f32.mrf.mxu1 }
 0x3f5   :  { %v911_v53 = vmul.f32 10.0, %v892_v14  ;;  %v908_v17 = vmul.f32 10.0, %v834_v49  ;;  %v918_v18 = vadd.f32 %v910_v10, %v285_v8  ;;  %v923_v23 = vsel %vm304_vm4, %v915_v12, -inf }
 0x3f6   :  { %v1770_v21 = vpop.f32.mrf.mxu0  ;;  %v921_v29 = vadd.f32 %v913_v20, %v284_v50 }
 0x3f7   :  { %v932_v24 = vsel %vm304_vm4, %v918_v18, -inf  ;;  %v919_v25 = vadd.f32 %v911_v53, %v282_v51  ;;  %v916_v26 = vadd.f32 %v908_v17, %v283_v15  ;;  %v914_v30 = vmul.f32 10.0, %v1770_v21 }
 0x3f8   :  { %v895_v27 = vpop.f32.mrf.mxu0  ;;  %924 = vmax.xlane.f32.xlu1 %v923_v23  ;;  %933 = vmax.xlane.f32.xlu0 %v932_v24  ;;  %v941_v13 = vsel %vm304_vm4, %v921_v29, -inf }
 0x3f9   :  { %v912_v28 = vmul.f32 10.0, %v895_v27  ;;  %v935_v31 = vsel %vm304_vm4, %v919_v25, -inf  ;;  %v926_v32 = vsel %vm304_vm4, %v916_v26, -inf  ;;  %v922_v34 = vadd.f32 %v914_v30, %v285_v8 }
 0x3fb   :  { %v920_v54 = vadd.f32 %v912_v28, %v283_v15  ;;  %v944_v35 = vsel %vm304_vm4, %v922_v34, -inf }
 0x3fc   :  { %936 = vmax.xlane.f32.xlu1 %v935_v31  ;;  %927 = vmax.xlane.f32.xlu0 %v926_v32 }
 0x3fd   :  { %v938_v33 = vsel %vm304_vm4, %v920_v54, -inf }
 0x400   :  { %942 = vmax.xlane.f32.xlu1 %v941_v13  ;;  %939 = vmax.xlane.f32.xlu0 %v938_v33 }
 0x404   :  { %945 = vmax.xlane.f32.xlu0 %v944_v35 }
 0x47d   :  { %v931_v36 = vpop.xlane.xlu1 %930 }
 0x47e   :  { %v949_v37 = vsub.f32 %v917_v48, %v931_v36 }
 0x480   :  { %v959_v38 = vmul.f32 1.442695, %v949_v37 }
 0x481   :  { %v925_v55 = vpop.xlane.xlu1 %924  ;;  %v934_v16 = vpop.xlane.xlu0 %933 }
 0x482   :  { %1904 = vpow2.f32 %v959_v38  ;;  %v947_v39 = vsub.f32 %v915_v12, %v925_v55  ;;  %v950_v40 = vsub.f32 %v918_v18, %v934_v16  ;;  %v1858_v16 = vld [vmem:[%s2331_s8] sm:$0xff]  }
 0x483   :  { %1787 = vmatprep.subr.bf16.mxu1 %v1858_v16 }
 0x484   :  { %v955_v41 = vmul.f32 1.442695, %v947_v39  ;;  %v961_v42 = vmul.f32 1.442695, %v950_v40  ;;  %v1859_v39 = vld [vmem:[%s2331_s8 + $0x8] sm:$0xff]  }
 0x485   :  { %v937_v43 = vpop.xlane.xlu1 %936  ;;  %v928_v44 = vpop.xlane.xlu0 %927  ;;  %1793 = vmatprep.subr.bf16.mxu0 %v1859_v39 }
 0x486   :  { %1906 = vpow2.f32 %v955_v41  ;;  %v951_v45 = vsub.f32 %v919_v25, %v937_v43  ;;  %v948_v5 = vsub.f32 %v916_v26, %v928_v44 }
 0x487   :  { %1908 = vpow2.f32 %v961_v42 }
 0x488   :  { %v963_v19 = vmul.f32 1.442695, %v951_v45  ;;  %v957_v56 = vmul.f32 1.442695, %v948_v5 }
 0x489   :  { %v943_v57 = vpop.xlane.xlu1 %942  ;;  %v940_v58 = vpop.xlane.xlu0 %939 }
 0x48a   :  { %1910 = vpow2.f32 %v963_v19  ;;  %v953_v59 = vsub.f32 %v921_v29, %v943_v57  ;;  %v952_v60 = vsub.f32 %v920_v54, %v940_v58 }
 0x48b   :  { %1912 = vpow2.f32 %v957_v56 }
 0x48c   :  { %v967_v61 = vmul.f32 1.442695, %v953_v59  ;;  %v965_v9 = vmul.f32 1.442695, %v952_v60  ;;  %v1860_v60 = vld [vmem:[%s2332_s9 + $0x8] sm:$0xff]  }
 0x48d   :  { %v946_v22 = vpop.xlane.xlu0 %945 }
 0x48e   :  { %1914 = vpow2.f32 %v967_v61  ;;  %v954_v62 = vsub.f32 %v922_v34, %v946_v22  ;;  %v1861_v61 = vld [vmem:[%s2332_s9] sm:$0xff]  }
 0x48f   :  { %v1905_v63 = vpop.eup %1904  ;;  %1916 = vpow2.f32 %v965_v9 }
 0x490   :  { %v969_v0 = vmul.f32 1.442695, %v954_v62  ;;  %v977_v1 = vsel %vm304_vm4, %v1905_v63, 0.0 }
 0x491   :  { %978 = vadd.xlane.f32.xlu1 %v977_v1 }
 0x492   :  { %1918 = vpow2.f32 %v969_v0 }
 0x493   :  { %v1907_v2 = vpop.eup %1906 }
 0x494   :  { %v1909_v3 = vpop.eup %1908  ;;  %v971_v46 = vsel %vm304_vm4, %v1907_v2, 0.0 }
 0x495   :  { %972 = vadd.xlane.f32.xlu1 %v971_v46  ;;  %v980_v50 = vsel %vm304_vm4, %v1909_v3, 0.0 }
 0x496   :  { %981 = vadd.xlane.f32.xlu0 %v980_v50 }
 0x497   :  { %v1911_v4 = vpop.eup %1910 }
 0x498   :  { %v1913_v47 = vpop.eup %1912  ;;  %v983_v51 = vsel %vm304_vm4, %v1911_v4, 0.0 }
 0x499   :  { %984 = vadd.xlane.f32.xlu1 %v983_v51  ;;  %v974_v6 = vsel %vm304_vm4, %v1913_v47, 0.0 }
 0x49a   :  { %975 = vadd.xlane.f32.xlu0 %v974_v6 }
 0x49b   :  { %v1915_v48 = vpop.eup %1914 }
 0x49c   :  { %v1917_v52 = vpop.eup %1916  ;;  %v989_v7 = vsel %vm304_vm4, %v1915_v48, 0.0 }
 0x49d   :  { %990 = vadd.xlane.f32.xlu1 %v989_v7  ;;  %v986_v8 = vsel %vm304_vm4, %v1917_v52, 0.0  ;;  %v1864_v7 = vld [vmem:[%s2333_s11 + $0x28] sm:$0xff]  }
 0x49e   :  { %987 = vadd.xlane.f32.xlu0 %v986_v8  ;;  %v1865_v8 = vld [vmem:[%s2333_s11 + $0x20] sm:$0xff]  }
 0x49f   :  { %v1919_v10 = vpop.eup %1918 }
 0x4a0   :  { %v992_v11 = vsel %vm304_vm4, %v1919_v10, 0.0 }
 0x4a2   :  { %993 = vadd.xlane.f32.xlu0 %v992_v11  ;;  %v1867_v11 = vld [vmem:[%s2333_s11 + $0x10] sm:$0xff]  }
 0x51a   :  { %v979_v12 = vpop.xlane.xlu1 %978 }
 0x51e   :  { %v973_v14 = vpop.xlane.xlu1 %972 }
 0x51f   :  { %v982_v49 = vpop.xlane.xlu0 %981 }
 0x520   :  { %1920 = vrcp.f32 %v982_v49  ;;  %v1601_v49 = vld [vmem:[%s2334_s10] ss:$0 sm:$0xff] }
 0x521   :  { %1922 = vrcp.f32 %v973_v14  ;;  %v1869_v14 = vld [vmem:[%s2333_s11] sm:$0xff]  }
 0x522   :  { %v985_v15 = vpop.xlane.xlu1 %984  ;;  %1924 = vrcp.f32 %v979_v12  ;;  %v1868_v12 = vld [vmem:[%s2333_s11 + $0x8] sm:$0xff]  }
 0x523   :  { %v976_v53 = vpop.xlane.xlu0 %975 }
 0x524   :  { %1926 = vrcp.f32 %v976_v53 }
 0x525   :  { %1928 = vrcp.f32 %v985_v15 }
 0x526   :  { %v991_v17 = vpop.xlane.xlu1 %990 }
 0x527   :  { %v988_v18 = vpop.xlane.xlu0 %987 }
 0x528   :  { %1930 = vrcp.f32 %v988_v18 }
 0x529   :  { %1932 = vrcp.f32 %v991_v17 }
 0x52b   :  { %v994_v20 = vpop.xlane.xlu0 %993 }
 0x52c   :  { %1934 = vrcp.f32 %v994_v20 }
 0x52d   :  { %v1921_v21 = vpop.eup %1920 }
 0x52e   :  { %v1923_v23 = vpop.eup %1922  ;;  %v1006_v26 = vmul.f32 %v1921_v21, %v1909_v3 }
 0x52f   :  { %v1925_v24 = vpop.eup %1924  ;;  %v1003_v27 = vmul.f32 %v1923_v23, %v1907_v2 }
 0x530   :  { %v1005_v30 = vmul.f32 %v1925_v24, %v1905_v63 }
 0x531   :  { %v1927_v25 = vpop.eup %1926 }
 0x532   :  { %v1004_v28 = vmul.f32 %v1927_v25, %v1913_v47  ;;  %v1929_v29 = vpop.eup %1928  ;;  %v1012_v54 = vpack.c.bf16 %v1006_v26, %v1005_v30 }
 0x533   :  { %v1007_v13 = vmul.f32 %v1929_v29, %v1911_v4 }
 0x534   :  { %v1011_v31 = vpack.c.bf16 %v1004_v28, %v1003_v27 }
 0x535   :  { %v1931_v32 = vpop.eup %1930 }
 0x536   :  { %1775 = vmatprep.mubr.msk.bf16.mxu1 %vm304_vm4, %v1011_v31  ;;  %v1008_v33 = vmul.f32 %v1931_v32, %v1917_v52  ;;  %v1933_v34 = vpop.eup %1932  ;;  %v1863_v52 = vld [vmem:[%s2333_s11 + $0x30] sm:$0xff]  }
 0x537   :  { %1776 = vmatmul.mubr.msk.bf16.vlgmr.msra.gmra.mxu1 %vm304_vm4, %v1012_v54  ;;  %v1009_v37 = vmul.f32 %v1933_v34, %v1915_v48  ;;  %v1862_v48 = vld [vmem:[%s2333_s11 + $0x38] sm:$0xff]  }
 0x538   :  { %v1013_v35 = vpack.c.bf16 %v1008_v33, %v1007_v13  ;;  %1788 = vmatpush3.bf16.msra.mxu1 %v1858_v16 }
 0x539   :  { %v1935_v36 = vpop.eup %1934  ;;  %1799 = vmatprep.subr.bf16.mxu1 %v1860_v60 }
 0x53a   :  { %v1010_v38 = vmul.f32 %v1935_v36, %v1919_v10  ;;  %1783 = vmatprep.mubr.msk.bf16.mxu0 %vm304_vm4, %v1013_v35  ;;  %v1866_v10 = vld [vmem:[%s2333_s11 + $0x18] sm:$0xff]  }
 0x53c   :  { %v1014_v55 = vpack.c.bf16 %v1010_v38, %v1009_v37 }
 0x53e   :  { %1784 = vmatmul.mubr.msk.bf16.vlgmr.msra.gmra.mxu0 %vm304_vm4, %v1014_v55 }
 0x53f   :  { %1794 = vmatpush3.bf16.msra.mxu0 %v1859_v39 }
 0x540   :  { %1807 = vmatprep.subr.bf16.mxu0 %v1862_v48 }
 0x5f7   :  { %v1777_v40 = vpop.f32.mrf.mxu1 }
 0x5f9   :  { %v1059_v41 = vpop.f32.mrf.mxu1 }
 0x5fb   :  { %v1778_v42 = vpop.f32.mrf.mxu1 }
 0x5fc   :  { %v1130_v5 = vpack.c.bf16 %v1778_v42, %v1777_v40 }
 0x5fd   :  { %v1062_v43 = vpop.f32.mrf.mxu1 }
 0x5fe   :  { %v1129_v44 = vpack.c.bf16 %v1062_v43, %v1059_v41  ;;  %v1785_v45 = vpop.f32.mrf.mxu0 }
 0x600   :  { %v1114_v19 = vpop.f32.mrf.mxu0  ;;  %1789 = vmatprep.mubr.msk.bf16.mxu1 %vm73_vm1, %v1129_v44 }
 0x601   :  { %1790 = vmatmul.mubr.msk.bf16.vlgmr.msra.gmra.mxu1 %vm73_vm1, %v1130_v5 }
 0x602   :  { %v1786_v56 = vpop.f32.mrf.mxu0  ;;  %1800 = vmatpush3.bf16.msra.mxu1 %v1860_v60 }
 0x603   :  { %v1132_v59 = vpack.c.bf16 %v1786_v56, %v1785_v45  ;;  %1801 = vmatprep.subr.bf16.mxu1 %v1861_v61 }
 0x604   :  { %v1117_v57 = vpop.f32.mrf.mxu0 }
 0x605   :  { %v1131_v58 = vpack.c.bf16 %v1117_v57, %v1114_v19 }
 0x606   :  { %1802 = vmatpush3.bf16.msra.mxu1 %v1861_v61 }
 0x607   :  { %1795 = vmatprep.mubr.msk.bf16.mxu0 %vm73_vm1, %v1131_v58 }
 0x608   :  { %1796 = vmatmul.mubr.msk.bf16.vlgmr.msra.gmra.mxu0 %vm73_vm1, %v1132_v59 }
 0x609   :  { %1808 = vmatpush3.bf16.msra.mxu0 %v1862_v48 }
 0x60a   :  { %1809 = vmatprep.subr.bf16.mxu0 %v1863_v52 }
 0x60d   :  { %1810 = vmatpush3.bf16.msra.mxu0 %v1863_v52 }
 0x60e   :  { %1811 = vmatprep.subr.bf16.mxu0 %v1864_v7 }
 0x611   :  { %1812 = vmatpush3.bf16.msra.mxu0 %v1864_v7 }
 0x612   :  { %1813 = vmatprep.subr.bf16.mxu0 %v1865_v8 }
 0x615   :  { %1814 = vmatpush3.bf16.msra.mxu0 %v1865_v8 }
 0x616   :  { %1815 = vmatprep.subr.bf16.mxu0 %v1866_v10 }
 0x619   :  { %1816 = vmatpush3.bf16.msra.mxu0 %v1866_v10 }
 0x61a   :  { %1817 = vmatprep.subr.bf16.mxu0 %v1867_v11 }
 0x61d   :  { %1818 = vmatpush3.bf16.msra.mxu0 %v1867_v11 }
 0x61e   :  { %1819 = vmatprep.subr.bf16.mxu0 %v1868_v12 }
 0x621   :  { %1820 = vmatpush3.bf16.msra.mxu0 %v1868_v12 }
 0x622   :  { %1821 = vmatprep.subr.bf16.mxu0 %v1869_v14 }
 0x625   :  { %1822 = vmatpush3.bf16.msra.mxu0 %v1869_v14 }
 0x6c1   :  { %v1791_v9 = vpop.f32.mrf.mxu1 }
 0x6c3   :  { %v1179_v22 = vpop.f32.mrf.mxu1 }
 0x6c5   :  { %v1792_v63 = vpop.f32.mrf.mxu1 }
 0x6c7   :  { %v1182_v2 = vpop.f32.mrf.mxu1 }
 0x6c8   :  { %v1797_v62 = vpop.f32.mrf.mxu0 }
 0x6c9   :  { %v2256_v47 = vadd.f32 %v1797_v62, %v1791_v9 }
 0x6ca   :  { %v1240_v0 = vpop.f32.mrf.mxu0 }
 0x6cb   :  { %v2252_v50 = vadd.f32 %v1240_v0, %v1179_v22 }
 0x6cc   :  { %v1798_v1 = vpop.f32.mrf.mxu0 }
 0x6cd   :  { %v2250_v3 = vadd.f32 %v1798_v1, %v1792_v63  ;;  %v1870_v1 = vld [vmem:[%s2335_s14 + $0x8] sm:$0xff]  }
 0x6ce   :  { %v1243_v46 = vpop.f32.mrf.mxu0  ;;  %1827 = vmatprep.subr.bf16.mxu1 %v1870_v1 }
 0x6cf   :  { %v2254_v4 = vadd.f32 %v1243_v46, %v1182_v2  ;;  %v1260_v6 = vpack.c.bf16 %v2250_v3, %v2256_v47  ;;  %v1871_v2 = vld [vmem:[%s2335_s14] sm:$0xff]  }
 0x6d1   :  { %v1259_v51 = vpack.c.bf16 %v2254_v4, %v2252_v50 }
 0x6d3   :  { %1803 = vmatprep.mubr.msk.bf16.mxu1 %vm304_vm4, %v1259_v51 }
 0x6d4   :  { %1804 = vmatmul.mubr.msk.bf16.vlgmr.msra.gmra.mxu1 %vm304_vm4, %v1260_v6  ;;  %v1606_v6 = vld [vmem:[%s2336_s12] ss:$0 sm:$0xff] }
 0x6d5   :  { %1828 = vmatpush3.bf16.msra.mxu1 %v1870_v1 }
 0x6d6   :  { %1829 = vmatprep.subr.bf16.mxu1 %v1871_v2 }
 0x6d9   :  { %1830 = vmatpush3.bf16.msra.mxu1 %v1871_v2 }
 0x794   :  { %v1805_v15 = vpop.f32.mrf.mxu1 }
 0x795   :  { %v1328_v53 = vadd.f32 %v1805_v15, %v1601_v49 }
 0x796   :  { %v1319_v17 = vpop.f32.mrf.mxu1 }
 0x797   :  { %v1336_v18 = vmul.f32 %v1328_v53, %v1328_v53  ;;  %v1320_v20 = vadd.f32 %v1601_v49, %v1319_v17 }
 0x798   :  { %v1806_v21 = vpop.f32.mrf.mxu1 }
 0x799   :  { %v1340_v23 = vmul.f32 %v1336_v18, %v1328_v53  ;;  %v1334_v24 = vmul.f32 %v1320_v20, %v1320_v20  ;;  %v1331_v25 = vadd.f32 %v1806_v21, %v1601_v49 }
 0x79a   :  { %v1322_v26 = vpop.f32.mrf.mxu1 }
 0x79b   :  { %v1344_v27 = vmul.f32 0.044715, %v1340_v23  ;;  %v1338_v28 = vmul.f32 %v1334_v24, %v1320_v20  ;;  %v1337_v29 = vmul.f32 %v1331_v25, %v1331_v25  ;;  %v1323_v30 = vadd.f32 %v1601_v49, %v1322_v26 }
 0x79d   :  { %v1348_v31 = vadd.f32 %v1344_v27, %v1328_v53  ;;  %v1342_v32 = vmul.f32 0.044715, %v1338_v28  ;;  %v1341_v54 = vmul.f32 %v1337_v29, %v1331_v25  ;;  %v1335_v13 = vmul.f32 %v1323_v30, %v1323_v30 }
 0x79f   :  { %v1352_v33 = vmul.f32 0.7978846, %v1348_v31  ;;  %v1346_v34 = vadd.f32 %v1342_v32, %v1320_v20  ;;  %v1345_v35 = vmul.f32 0.044715, %v1341_v54  ;;  %v1339_v36 = vmul.f32 %v1335_v13, %v1323_v30 }
 0x7a1   :  { %v1350_v37 = vmul.f32 0.7978846, %v1346_v34  ;;  %v1349_v38 = vadd.f32 %v1345_v35, %v1331_v25  ;;  %v1343_v55 = vmul.f32 0.044715, %v1339_v36  ;;  %1936 = vtanh.f32 %v1352_v33 }
 0x7a3   :  { %1938 = vtanh.f32 %v1350_v37  ;;  %v1353_v16 = vmul.f32 0.7978846, %v1349_v38  ;;  %v1347_v39 = vadd.f32 %v1343_v55, %v1323_v30 }
 0x7a5   :  { %1940 = vtanh.f32 %v1353_v16  ;;  %v1351_v40 = vmul.f32 0.7978846, %v1347_v39 }
 0x7a7   :  { %1942 = vtanh.f32 %v1351_v40 }
 0x7ae   :  { %v1937_v41 = vpop.eup %1936 }
 0x7af   :  { %v1360_v45 = vadd.f32 1.0, %v1937_v41 }
 0x7b0   :  { %v1939_v42 = vpop.eup %1938 }
 0x7b1   :  { %v1358_v43 = vadd.f32 1.0, %v1939_v42  ;;  %v1364_v59 = vmul.f32 0.5, %v1360_v45 }
 0x7b2   :  { %v1941_v44 = vpop.eup %1940 }
 0x7b3   :  { %v1361_v5 = vadd.f32 1.0, %v1941_v44  ;;  %v1362_v58 = vmul.f32 0.5, %v1358_v43  ;;  %v1368_v62 = vmul.f32 %v1364_v59, %v1328_v53 }
 0x7b4   :  { %v1943_v19 = vpop.eup %1942 }
 0x7b5   :  { %v1365_v56 = vmul.f32 0.5, %v1361_v5  ;;  %v1359_v57 = vadd.f32 1.0, %v1943_v19  ;;  %v1366_v9 = vmul.f32 %v1362_v58, %v1320_v20 }
 0x7b7   :  { %v1363_v60 = vmul.f32 0.5, %v1359_v57  ;;  %v1369_v61 = vmul.f32 %v1365_v56, %v1331_v25 }
 0x7b9   :  { %v1367_v22 = vmul.f32 %v1363_v60, %v1323_v30  ;;  %v1371_v0 = vpack.c.bf16 %v1369_v61, %v1368_v62 }
 0x7bb   :  { %v1370_v63 = vpack.c.bf16 %v1367_v22, %v1366_v9 }
 0x7bd   :  { %1823 = vmatprep.mubr.bf16.mxu0 %v1370_v63 }
 0x7be   :  { %1824 = vmatmul.mubr.bf16.vlgmr.msra.gmra.mxu0 %v1371_v0 }
 0x87e   :  { %v1825_v46 = vpop.f32.mrf.mxu0 }
 0x87f   :  { %v1469_v8 = vadd.f32 %v1825_v46, %v1606_v6 }
 0x880   :  { %v1460_v51 = vpop.f32.mrf.mxu0 }
 0x881   :  { %v1461_v52 = vadd.f32 %v1606_v6, %v1460_v51  ;;  %v1477_v15 = vadd.f32 %v1469_v8, %v2256_v47 }
 0x882   :  { %v1826_v48 = vpop.f32.mrf.mxu0 }
 0x883   :  { %v1472_v7 = vadd.f32 %v1826_v48, %v1606_v6  ;;  %v1475_v14 = vadd.f32 %v1461_v52, %v2252_v50 }
 0x884   :  { %v1463_v10 = vpop.f32.mrf.mxu0 }
 0x885   :  { %v1464_v11 = vadd.f32 %v1606_v6, %v1463_v10  ;;  %v1478_v12 = vadd.f32 %v1472_v7, %v2250_v3 }
 0x887   :  { %v1476_v49 = vadd.f32 %v1464_v11, %v2254_v4  ;;  %v1480_v17 = vpack.c.bf16 %v1478_v12, %v1477_v15 }
 0x889   :  { %v1479_v53 = vpack.c.bf16 %v1476_v49, %v1475_v14 }
 0x88b   :  { %1831 = vmatprep.mubr.msk.bf16.mxu1 %vm304_vm4, %v1479_v53 }
 0x88c   :  { %1832 = vmatmul.mubr.msk.bf16.vlgmr.msra.gmra.mxu1 %vm304_vm4, %v1480_v17 }
 0x94c   :  { %v1833_v18 = vpop.f32.mrf.mxu1 }
 0x94d   :  { %1550 = vst.msk [vmem:[%s2337_s15 + $0x10] sm:$0xff] %vm73_vm1, %v1833_v18 }
 0x94e   :  { %v1533_v20 = vpop.f32.mrf.mxu1 }
 0x94f   :  { %1548 = vst.msk [vmem:[%s2337_s15] sm:$0xff] %vm73_vm1, %v1533_v20 }
 0x950   :  { %v1834_v3 = vpop.f32.mrf.mxu1 }
 0x951   :  { %1551 = vst.msk [vmem:[%s2337_s15 + $0x18] sm:$0xff] %vm73_vm1, %v1834_v3 }
 0x952   :  { %v1536_v50 = vpop.f32.mrf.mxu1 }
 0x953   :  { %1549 = vst.msk [vmem:[%s2337_s15 + $0x8] sm:$0xff] %vm73_vm1, %v1536_v50 }

</bundles_post_ra>
